<compile_context>
chip_gen: v7x
topology: tpu7x:2x2x1
jax: 0.10.0
libtpu: 0.0.40
codegen_flags: <defaults>
</compile_context>

<pallas_src>
import jax
import jax.numpy as jnp
from jax.experimental import pallas as pl
from jax.experimental.pallas import tpu as pltpu

HIDDEN = 64
NUM_INPUTS = 32
PACKED = 2 * HIDDEN        # 128 -> exactly one lane-dense vreg / MXU tile width
BATCH = 2                  # small smoke-test batch
DEFAULT_TILE_B = 1024      # rows per grid step at large batch (multiple of 8)


# ----------------------------------------------------------------------------
# Pallas kernel: whole MLPBase hot path as three lane-dense 128-wide matmuls.
#   h1  = tanh(x  @ W1 + b1)    W1 = [Wa1 | Wc1]                      (in , 128)
#   h2  = tanh(h1 @ W2 + b2)    W2 = blockdiag(Wa2, Wc2)              (128, 128)
#   out =      h2 @ W3 + b3     W3 = blockdiag(I_64, wcl replicated)  (128, 128)
# out lanes 0..63 = hidden_actor, lanes 64..127 = value (broadcast).
# b_ref rows (always f32): 0 = b1, 1 = b2, 2 = b3 (zeros | bcl broadcast).
# ----------------------------------------------------------------------------
def mlpbase_kernel(x_ref, w1_ref, w2_ref, w3_ref, b_ref, out_ref):
    x = x_ref[...]
    h1 = jnp.tanh(
        jnp.dot(x, w1_ref[...], preferred_element_type=jnp.float32)
        + b_ref[0:1, :]
    )
    h2 = jnp.tanh(
        jnp.dot(h1.astype(w2_ref.dtype), w2_ref[...],
                preferred_element_type=jnp.float32)
        + b_ref[1:2, :]
    )
    out_ref[...] = (
        jnp.dot(h2.astype(w3_ref.dtype), w3_ref[...],
                preferred_element_type=jnp.float32)
        + b_ref[2:3, :]
    ).astype(out_ref.dtype)


# ----------------------------------------------------------------------------
# Parameter init (deterministic): replicates init_normc_ (row-normalized
# normal) for weights and zero bias, matching the PyTorch module's init_.
# PyTorch Linear weight shape is (out, in); normalization is over the input
# dim (dim=1), then we transpose to (in, out).
# ----------------------------------------------------------------------------
def init_normc_linear(key, in_features, out_features):
    w = jax.random.normal(key, (out_features, in_features), dtype=jnp.float32)
    w = w / jnp.sqrt(jnp.sum(w * w, axis=1, keepdims=True))
    b = jnp.zeros((1, out_features), dtype=jnp.float32)
    return w.T, b  # (in, out), (1, out)


def make_params(key, num_inputs=NUM_INPUTS, hidden=HIDDEN):
    keys = jax.random.split(key, 5)
    wa1, ba1 = init_normc_linear(keys[0], num_inputs, hidden)
    wa2, ba2 = init_normc_linear(keys[1], hidden, hidden)
    wc1, bc1 = init_normc_linear(keys[2], num_inputs, hidden)
    wc2, bc2 = init_normc_linear(keys[3], hidden, hidden)
    wcl, bcl = init_normc_linear(keys[4], hidden, 1)
    return dict(wa1=wa1, ba1=ba1, wa2=wa2, ba2=ba2,
                wc1=wc1, bc1=bc1, wc2=wc2, bc2=bc2,
                wcl=wcl, bcl=bcl)


# ----------------------------------------------------------------------------
# One-time wrapper-side packing into lane-dense kernel operands.
# dtype controls the matmul-input dtype (f32 default; bf16 for v6e/v7x HBM
# bandwidth).  Biases always stay f32 (f32 accumulation + f32 tanh).
# ----------------------------------------------------------------------------
def pack_params(params, hidden=HIDDEN, dtype=jnp.float32):
    assert 2 * hidden == PACKED == 128, "packing layout hard-codes 2*HIDDEN == 128"
    f32 = jnp.float32

    w1 = jnp.concatenate([params["wa1"], params["wc1"]], axis=1)        # (in, 128)

    w2 = jnp.zeros((PACKED, PACKED), f32)                               # (128, 128)
    w2 = w2.at[:hidden, :hidden].set(params["wa2"])
    w2 = w2.at[hidden:, hidden:].set(params["wc2"])

    # W3: identity passes actor lanes through unchanged; wcl replicated into
    # columns 64..127 makes the MXU produce value broadcast over those lanes.
    w3 = jnp.zeros((PACKED, PACKED), f32)                               # (128, 128)
    w3 = w3.at[:hidden, :hidden].set(jnp.eye(hidden, dtype=f32))
    w3 = w3.at[hidden:, hidden:].set(
        jnp.broadcast_to(params["wcl"], (hidden, hidden)))

    b1 = jnp.concatenate([params["ba1"], params["bc1"]], axis=1)        # (1, 128)
    b2 = jnp.concatenate([params["ba2"], params["bc2"]], axis=1)        # (1, 128)
    b3 = jnp.concatenate(
        [jnp.zeros((1, hidden), f32),
         jnp.broadcast_to(params["bcl"][:, :1], (1, hidden))], axis=1)  # (1, 128)
    b = jnp.concatenate([b1, b2, b3], axis=0).astype(f32)               # (3, 128)

    return w1.astype(dtype), w2.astype(dtype), w3.astype(dtype), b


# ----------------------------------------------------------------------------
# Wrapper: MLPBase.forward(inputs, rnn_hxs, masks) -> (value, hidden_actor, rnn_hxs)
# ----------------------------------------------------------------------------
def mlpbase_forward(inputs, rnn_hxs, masks, packed, *,
                    tile_b=DEFAULT_TILE_B, vmem_limit_bytes=None):
    # TODO(synk): recurrent GRU path (_forward_gru) not implemented; this is
    # the default recurrent=False configuration, so rnn_hxs passes through.
    del masks
    assert tile_b % 8 == 0, "tile_b must be a multiple of 8 (f32 sublanes)"
    w1, w2, w3, b = packed
    assert w1.shape[1] == PACKED and w2.shape == (PACKED, PACKED)

    B, num_inputs = inputs.shape
    x = inputs.astype(w1.dtype)

    if B <= tile_b:
        tb, grid_b, pad = B, 1, 0          # single full-array block
    else:
        tb = tile_b
        grid_b = pl.cdiv(B, tb)
        pad = grid_b * tb - B
        if pad:
            x = jnp.pad(x, ((0, pad), (0, 0)))

    const = lambda i: (0, 0)               # weights stay VMEM-resident across tiles

    out = pl.pallas_call(
        mlpbase_kernel,
        out_shape=jax.ShapeDtypeStruct((grid_b * tb, PACKED), jnp.float32),
        grid_spec=pltpu.PrefetchScalarGridSpec(
            num_scalar_prefetch=0,
            grid=(grid_b,),
            in_specs=[
                pl.BlockSpec((tb, num_inputs), lambda i: (i, 0)),  # x tile
                pl.BlockSpec(w1.shape, const),
                pl.BlockSpec(w2.shape, const),
                pl.BlockSpec(w3.shape, const),
                pl.BlockSpec(b.shape, const),
            ],
            out_specs=pl.BlockSpec((tb, PACKED), lambda i: (i, 0)),
        ),
        compiler_params=pltpu.CompilerParams(
            dimension_semantics=("parallel",),      # 2 TCs on v7x; no-op elsewhere
            vmem_limit_bytes=vmem_limit_bytes,
        ),
    )(x, w1, w2, w3, b)

    out = out[:B]
    hidden_actor = out[:, :HIDDEN]
    value = out[:, HIDDEN:HIDDEN + 1]   # value broadcast into lanes 64..127
    return value, hidden_actor, rnn_hxs


# ----------------------------------------------------------------------------
# Pure-JAX reference.  With compute_dtype=bf16 it mirrors the kernel's rounding
# points (bf16 matmul inputs, f32 accumulation, f32 bias + tanh), so the bf16
# kernel can be checked with a tight-ish tolerance.
# ----------------------------------------------------------------------------
def mlpbase_reference(inputs, params, compute_dtype=jnp.float32):
    def lin(x, w, bias):
        return jnp.dot(x.astype(compute_dtype), w.astype(compute_dtype),
                       preferred_element_type=jnp.float32) + bias

    ha = jnp.tanh(lin(inputs, params["wa1"], params["ba1"]))
    ha = jnp.tanh(lin(ha, params["wa2"], params["ba2"]))
    hc = jnp.tanh(lin(inputs, params["wc1"], params["bc1"]))
    hc = jnp.tanh(lin(hc, params["wc2"], params["bc2"]))
    value = lin(hc, params["wcl"], params["bcl"])
    actor = ha.astype(compute_dtype).astype(jnp.float32)  # kernel's W3 identity pass
    return value, actor


if __name__ == "__main__":
    key = jax.random.PRNGKey(0)
    k_param, k_x, k_x2 = jax.random.split(key, 3)

    params = make_params(k_param)

    # --- small-batch smoke test: f32, single full-array block ---------------
    packed_f32 = pack_params(params, dtype=jnp.float32)
    x = jax.random.normal(k_x, (BATCH, NUM_INPUTS), dtype=jnp.float32)
    rnn_hxs = jnp.zeros((BATCH, 1), dtype=jnp.float32)   # non-recurrent hidden size = 1
    masks = jnp.ones((BATCH, 1), dtype=jnp.float32)

    value, hidden_actor, rnn_hxs_out = mlpbase_forward(x, rnn_hxs, masks, packed_f32)
    jax.block_until_ready((value, hidden_actor, rnn_hxs_out))

    ref_value, ref_actor = mlpbase_reference(x, params)
    assert value.shape == (BATCH, 1)
    assert hidden_actor.shape == (BATCH, HIDDEN)
    assert rnn_hxs_out.shape == rnn_hxs.shape
    assert jnp.allclose(value, ref_value, atol=1e-4, rtol=1e-4)
    assert jnp.allclose(hidden_actor, ref_actor, atol=1e-4, rtol=1e-4)

    # --- large-batch path: batch grid (pipelined) + bf16 matmul inputs ------
    B2 = 2051                                   # non-multiple of tile -> pad path
    packed_bf16 = pack_params(params, dtype=jnp.bfloat16)
    x2 = jax.random.normal(k_x2, (B2, NUM_INPUTS), dtype=jnp.float32)
    rnn_hxs2 = jnp.zeros((B2, 1), dtype=jnp.float32)
    masks2 = jnp.ones((B2, 1), dtype=jnp.float32)

    value2, actor2, _ = mlpbase_forward(x2, rnn_hxs2, masks2, packed_bf16,
                                        tile_b=512)
    jax.block_until_ready((value2, actor2))

    ref_value2, ref_actor2 = mlpbase_reference(x2, params,
                                               compute_dtype=jnp.bfloat16)
    assert value2.shape == (B2, 1) and actor2.shape == (B2, HIDDEN)
    assert jnp.allclose(value2, ref_value2, atol=2e-2)
    assert jnp.allclose(actor2, ref_actor2, atol=2e-2)

    print("KERNEL_OK")
</pallas_src>

<mosaic_0001>
module attributes {stable_mosaic.version = 11 : i64} {
  func.func @mlpbase_kernel(%arg0: i32, %arg1: memref<2x32xf32, #tpu.memory_space<vmem>>, %arg2: memref<32x128xf32, #tpu.memory_space<vmem>>, %arg3: memref<128x128xf32, #tpu.memory_space<vmem>>, %arg4: memref<128x128xf32, #tpu.memory_space<vmem>>, %arg5: memref<3x128xf32, #tpu.memory_space<vmem>>, %arg6: memref<2x128xf32, #tpu.memory_space<vmem>>) attributes {dimension_semantics = [#tpu.dimension_semantics<parallel>], iteration_bounds = array<i64: 1>, scalar_prefetch = 0 : i64, scratch_operands = 0 : i64, tpu.core_type = #tpu.core_type<tc>, window_params = [{transform_indices = @transform_0, window_bounds = array<i64: 2, 32>}, {pipeline_mode = #tpu.pipeline_mode<synchronous>, transform_indices = @transform_1, window_bounds = array<i64: 32, 128>}, {pipeline_mode = #tpu.pipeline_mode<synchronous>, transform_indices = @transform_2, window_bounds = array<i64: 128, 128>}, {pipeline_mode = #tpu.pipeline_mode<synchronous>, transform_indices = @transform_3, window_bounds = array<i64: 128, 128>}, {pipeline_mode = #tpu.pipeline_mode<synchronous>, transform_indices = @transform_4, window_bounds = array<i64: 3, 128>}, {transform_indices = @transform_5, window_bounds = array<i64: 2, 128>}]} {
    %c0 = arith.constant 0 : index
    %c0_0 = arith.constant 0 : index
    %0 = vector.load %arg1[%c0, %c0_0] : memref<2x32xf32, #tpu.memory_space<vmem>>, vector<2x32xf32>
    %c0_1 = arith.constant 0 : index
    %c0_2 = arith.constant 0 : index
    %1 = vector.load %arg2[%c0_1, %c0_2] : memref<32x128xf32, #tpu.memory_space<vmem>>, vector<32x128xf32>
    %cst = arith.constant dense<0.000000e+00> : vector<2x128xf32>
    %2 = tpu.matmul %0, %1, %cst {dimension_numbers = #tpu.dot_dimension_numbers<[1], [0], [0], [1], [0, 0, 1, 1], [], []>} : vector<2x32xf32>, vector<32x128xf32>, vector<2x128xf32> -> vector<2x128xf32>
    %c0_3 = arith.constant 0 : index
    %c0_4 = arith.constant 0 : index
    %3 = vector.load %arg5[%c0_3, %c0_4] : memref<3x128xf32, #tpu.memory_space<vmem>>, vector<1x128xf32>
    %4 = vector.broadcast %3 : vector<1x128xf32> to vector<2x128xf32>
    %5 = arith.addf %2, %4 : vector<2x128xf32>
    %6 = math.tanh %5 : vector<2x128xf32>
    %c0_5 = arith.constant 0 : index
    %c0_6 = arith.constant 0 : index
    %7 = vector.load %arg3[%c0_5, %c0_6] : memref<128x128xf32, #tpu.memory_space<vmem>>, vector<128x128xf32>
    %cst_7 = arith.constant dense<0.000000e+00> : vector<2x128xf32>
    %8 = tpu.matmul %6, %7, %cst_7 {dimension_numbers = #tpu.dot_dimension_numbers<[1], [0], [0], [1], [0, 0, 1, 1], [], []>} : vector<2x128xf32>, vector<128x128xf32>, vector<2x128xf32> -> vector<2x128xf32>
    %c1 = arith.constant 1 : index
    %c0_8 = arith.constant 0 : index
    %9 = vector.load %arg5[%c1, %c0_8] : memref<3x128xf32, #tpu.memory_space<vmem>>, vector<1x128xf32>
    %10 = vector.broadcast %9 : vector<1x128xf32> to vector<2x128xf32>
    %11 = arith.addf %8, %10 : vector<2x128xf32>
    %12 = math.tanh %11 : vector<2x128xf32>
    %c0_9 = arith.constant 0 : index
    %c0_10 = arith.constant 0 : index
    %13 = vector.load %arg4[%c0_9, %c0_10] : memref<128x128xf32, #tpu.memory_space<vmem>>, vector<128x128xf32>
    %cst_11 = arith.constant dense<0.000000e+00> : vector<2x128xf32>
    %14 = tpu.matmul %12, %13, %cst_11 {dimension_numbers = #tpu.dot_dimension_numbers<[1], [0], [0], [1], [0, 0, 1, 1], [], []>} : vector<2x128xf32>, vector<128x128xf32>, vector<2x128xf32> -> vector<2x128xf32>
    %c2 = arith.constant 2 : index
    %c0_12 = arith.constant 0 : index
    %15 = vector.load %arg5[%c2, %c0_12] : memref<3x128xf32, #tpu.memory_space<vmem>>, vector<1x128xf32>
    %16 = vector.broadcast %15 : vector<1x128xf32> to vector<2x128xf32>
    %17 = arith.addf %14, %16 : vector<2x128xf32>
    %c0_13 = arith.constant 0 : index
    %c0_14 = arith.constant 0 : index
    %18 = vector.load %arg6[%c0_13, %c0_14] : memref<2x128xf32, #tpu.memory_space<vmem>>, vector<2x128xf32>
    tpu.vector_store %arg6[%c0_13, %c0_14], %17 {strides = array<i32>} : memref<2x128xf32, #tpu.memory_space<vmem>>, vector<2x128xf32>,
    return
  }
  func.func @transform_0(%arg0: i32) -> (i32, i32) {
    %c0_i32 = arith.constant 0 : i32
    %c0_i32_0 = arith.constant 0 : i32
    return %arg0, %c0_i32 : i32, i32
  }
  func.func @transform_1(%arg0: i32) -> (i32, i32) {
    %c0_i32 = arith.constant 0 : i32
    %c0_i32_0 = arith.constant 0 : i32
    %c0_i32_1 = arith.constant 0 : i32
    return %c0_i32, %c0_i32_0 : i32, i32
  }
  func.func @transform_2(%arg0: i32) -> (i32, i32) {
    %c0_i32 = arith.constant 0 : i32
    %c0_i32_0 = arith.constant 0 : i32
    %c0_i32_1 = arith.constant 0 : i32
    return %c0_i32, %c0_i32_0 : i32, i32
  }
  func.func @transform_3(%arg0: i32) -> (i32, i32) {
    %c0_i32 = arith.constant 0 : i32
    %c0_i32_0 = arith.constant 0 : i32
    %c0_i32_1 = arith.constant 0 : i32
    return %c0_i32, %c0_i32_0 : i32, i32
  }
  func.func @transform_4(%arg0: i32) -> (i32, i32) {
    %c0_i32 = arith.constant 0 : i32
    %c0_i32_0 = arith.constant 0 : i32
    %c0_i32_1 = arith.constant 0 : i32
    return %c0_i32, %c0_i32_0 : i32, i32
  }
  func.func @transform_5(%arg0: i32) -> (i32, i32) {
    %c0_i32 = arith.constant 0 : i32
    %c0_i32_0 = arith.constant 0 : i32
    return %arg0, %c0_i32 : i32, i32
  }
}

</mosaic_0001>

<bundles_post_ra>
// kernel: tpu_custom_call.1
= control target key start
LH: loop header
LB: loop body
LE: loop exit
PB: predicated region body
PF: predicated region fallthrough
CT: control target
= control target key end

     0   :  { %10 = vsyncpa [#allocation3], 0  ;;  %s809_s0 = inlined_call_operand.hbm [shape: f32[2,32], index: 0, kind: input, shape index: {}]   ;;  %s810_s1 = inlined_call_operand.hbm [shape: f32[32,128], index: 1, kind: input, shape index: {}]   ;;  %s811_s2 = inlined_call_operand.hbm [shape: f32[128,128], index: 2, kind: input, shape index: {}]   ;;  %s812_s3 = inlined_call_operand.hbm [shape: f32[128,128], index: 3, kind: input, shape index: {}]   ;;  %s813_s4 = inlined_call_operand.vmem [shape: f32[3,128], index: 4, kind: input, shape index: {}]   ;;  %s814_s5 = inlined_call_operand.hbm [shape: f32[2,128], index: 5, kind: output, shape index: {}]  }
   0x1   :  { %11 = vsyncpa [#allocation6], 0 }
   0x2   :  { %12 = vsyncpa [#allocation9], 0 }
   0x3   :  { %13 = vsyncpa [#allocation4], 0  ;;  %s670_s18 = smov [#allocation5]   ;;  %s552_s22 = scalar_lea.hbm %s810_s1, 512 }
   0x4   :  { %s29_s19 = sshll.u32 %s670_s18, 4  ;;  %p553_p0 = scmp.ne.s32.totalorder %s810_s1, %s552_s22  ;;  %s30_s19 = int_to_ptr.vmem [resolvable:$true] %s29_s19 }
   0x5   :  { %p556_p1 = scmp.lt.u32.totalorder %s552_s22, %s810_s1 }
   0x7   :  { %p558_p2 = pnand %p556_p1, %p553_p0 }
   0x9   :  { %561 = shalt.err (!%p558_p2)
}
   0xa   :  { %s562_s27 = scalar_lea.vmem %s30_s19, 512  ;;  %p567_p4 = scmp.lt.s32.totalorder %s30_s19, %s30_s19 }
   0xb   :  { %p563_p3 = scmp.ne.s32.totalorder %s30_s19, %s562_s27  ;;  %p568_p5 = scmp.lt.s32.totalorder %s562_s27, %s562_s27 }
   0xd   :  { %p569_p6 = por %p568_p5, %p567_p4 }
   0xf   :  { %p570_p7 = pnand %p569_p6, %p563_p3 }
  0x11   :  { %573 = shalt.err (!%p570_p7)
}
  0x12   :  { %s671_s28 = smov 128   ;;  %s672_s29 = smov 8  }
  0x13   :  { %35 = dma.hbm_to_vmem [thread:$0]  %s810_s1, 512, %s30_s19, [#allocation6], %s671_s28, %s671_s28, %s672_s29  }
  0x14   :  { %s673_s7 = smov [#allocation2]   ;;  %s674_s9 = smov [#allocation7]  }
  0x15   :  { %s20_s8 = sshll.u32 %s673_s7, 4  ;;  %s41_s10 = sshll.u32 %s674_s9, 4  ;;  %s21_s8 = int_to_ptr.vmem [resolvable:$true] %s20_s8  ;;  %s42_s10 = int_to_ptr.vmem [resolvable:$true] %s41_s10 }
  0x16   :  { %s574_s13 = scalar_lea.hbm %s809_s0, 32 }
  0x17   :  { %p575_p8 = scmp.ne.s32.totalorder %s809_s0, %s574_s13  ;;  %p578_p9 = scmp.lt.u32.totalorder %s574_s13, %s809_s0 }
  0x19   :  { %p580_p10 = pnand %p578_p9, %p575_p8 }
  0x1b   :  { %583 = shalt.err (!%p580_p10)
}
  0x1c   :  { %s584_s1 = scalar_lea.vmem %s21_s8, 32  ;;  %p589_p12 = scmp.lt.s32.totalorder %s21_s8, %s21_s8 }
  0x1d   :  { %p585_p11 = scmp.ne.s32.totalorder %s21_s8, %s584_s1  ;;  %p590_p13 = scmp.lt.s32.totalorder %s584_s1, %s584_s1 }
  0x1f   :  { %p591_p0 = por %p590_p13, %p589_p12 }
  0x21   :  { %p592_p1 = pnand %p591_p0, %p585_p11 }
  0x23   :  { %595 = shalt.err (!%p592_p1)
}
  0x24   :  { %23 = dma.hbm_to_vmem [thread:$0]  %s809_s0, 32, %s21_s8, [#allocation3]  }
  0x25   :  { %s596_s22 = scalar_lea.hbm %s811_s2, 2048 }
  0x26   :  { %p597_p2 = scmp.ne.s32.totalorder %s811_s2, %s596_s22  ;;  %p600_p3 = scmp.lt.u32.totalorder %s596_s22, %s811_s2 }
  0x28   :  { %p602_p4 = pnand %p600_p3, %p597_p2 }
  0x2a   :  { %605 = shalt.err (!%p602_p4)
}
  0x2b   :  { %s606_s27 = scalar_lea.vmem %s42_s10, 2048  ;;  %p611_p6 = scmp.lt.s32.totalorder %s42_s10, %s42_s10 }
  0x2c   :  { %p607_p5 = scmp.ne.s32.totalorder %s42_s10, %s606_s27  ;;  %p612_p7 = scmp.lt.s32.totalorder %s606_s27, %s606_s27 }
  0x2e   :  { %p613_p8 = por %p612_p7, %p611_p6 }
  0x30   :  { %p614_p9 = pnand %p613_p8, %p607_p5 }
  0x32   :  { %617 = shalt.err (!%p614_p9)
}
  0x33   :  { %47 = dma.hbm_to_vmem [thread:$0]  %s811_s2, 2048, %s42_s10, [#allocation6], %s671_s28, %s671_s28, %s672_s29  }
  0x34   :  { %s675_s6 = smov [#allocation8]   ;;  %s618_s11 = scalar_lea.hbm %s812_s3, 2048 }
  0x35   :  { %s53_s7 = sshll.u32 %s675_s6, 4  ;;  %p619_p10 = scmp.ne.s32.totalorder %s812_s3, %s618_s11  ;;  %s54_s7 = int_to_ptr.vmem [resolvable:$true] %s53_s7 }
  0x36   :  { %p622_p11 = scmp.lt.u32.totalorder %s618_s11, %s812_s3 }
  0x38   :  { %p624_p12 = pnand %p622_p11, %p619_p10 }
  0x3a   :  { %627 = shalt.err (!%p624_p12)
}
  0x3b   :  { %s628_s16 = scalar_lea.vmem %s54_s7, 2048  ;;  %p633_p0 = scmp.lt.s32.totalorder %s54_s7, %s54_s7 }
  0x3c   :  { %p629_p13 = scmp.ne.s32.totalorder %s54_s7, %s628_s16  ;;  %p634_p1 = scmp.lt.s32.totalorder %s628_s16, %s628_s16 }
  0x3e   :  { %p635_p2 = por %p634_p1, %p633_p0 }
  0x40   :  { %p636_p3 = pnand %p635_p2, %p629_p13 }
  0x42   :  { %639 = shalt.err (!%p636_p3)
}
  0x43   :  { %59 = dma.hbm_to_vmem [thread:$0]  %s812_s3, 2048, %s54_s7, [#allocation9], %s671_s28, %s671_s28, %s672_s29  }
  0x44   :  { %662 = dma.done.wait [#allocation3], 32  }
  0x45   :  { %663 = vsyncadd [#allocation3], 4294967264 }
  0x46   :  { %664 = dma.done.wait [#allocation6], 2560  }
  0x47   :  { %665 = vsyncadd [#allocation6], 4294964736 }
  0x48   :  { %666 = dma.done.wait [#allocation9], 2048  }
  0x49   :  { %667 = vsyncadd [#allocation9], 4294965248  ;;  %v676_v0 = vmov 0.0|0.0   ;;  %vm677_vm0 = vmmov 0   ;;  %v678_v1 = vmov 0.0   ;;  %v75_v2 = vld [vmem:[#allocation5] sm:$0xff] }
  0x4a   :  { %484 = vmatprep.subr.bf16.mxu0 %v676_v0  ;;  %411 = vmatprep.mubr.msk.f32.mxu0 %vm677_vm0, %v678_v1  ;;  %v76_v3 = vld [vmem:[#allocation5 + $0x8] sm:$0xff]  ;;  %v77_v4 = vld [vmem:[#allocation5 + $0x10] sm:$0xff]  ;;  %v78_v6 = vld [vmem:[#allocation5 + $0x18] sm:$0xff]  ;;  %vm84_vm1 = vcmask 261120   ;;  %s679_s19 = smov [#allocation10]  }
  0x4b   :  { %490 = vmatprep.subr.bf16.mxu1 %v676_v0  ;;  %446 = vmatprep.mubr.msk.f32.mxu1 %vm677_vm0, %v678_v1  ;;  %v485_v5 = vpack.c.bf16 %v76_v3, %v75_v2  ;;  %v159_v7 = vld [vmem:[#allocation7] sm:$0xff]  ;;  %v160_v8 = vld [vmem:[#allocation7 + $0x8] sm:$0xff]  ;;  %v161_v9 = vld [vmem:[#allocation7 + $0x10] sm:$0xff]  ;;  %v488_v11 = vpack.c.bf16 %v78_v6, %v77_v4  ;;  %s349_s20 = sshll.u32 %s679_s19, 4  ;;  %s350_s20 = int_to_ptr.vmem [resolvable:$true] %s349_s20 }
  0x4c   :  { %v162_v10 = vld [vmem:[#allocation7 + $0x18] sm:$0xff]  ;;  %v491_v12 = vpack.c.bf16 %v160_v8, %v159_v7  ;;  %v163_v14 = vld [vmem:[#allocation7 + $0x20] sm:$0xff]  ;;  %v164_v15 = vld [vmem:[#allocation7 + $0x28] sm:$0xff]  ;;  %s640_s21 = scalar_lea.vmem %s350_s20, 32  ;;  %p645_p5 = scmp.lt.s32.totalorder %s350_s20, %s350_s20 }
  0x4d   :  { %486 = vmatpush3.bf16.msra.mxu0 %v485_v5  ;;  %v494_v13 = vpack.c.bf16 %v162_v10, %v161_v9  ;;  %v74_v16 = vld [vmem:[#allocation2] sm:$0x3]  ;;  %v497_v17 = vpack.c.bf16 %v164_v15, %v163_v14  ;;  %v165_v18 = vld [vmem:[#allocation7 + $0x30] sm:$0xff]  ;;  %v167_v21 = vld [vmem:[#allocation7 + $0x40] sm:$0xff]  ;;  %p641_p4 = scmp.ne.s32.totalorder %s350_s20, %s640_s21  ;;  %p646_p6 = scmp.lt.s32.totalorder %s640_s21, %s640_s21 }
  0x4e   :  { %487 = vmatprep.subr.bf16.mxu0 %v676_v0  ;;  %492 = vmatpush3.bf16.msra.mxu1 %v491_v12  ;;  %v166_v19 = vld [vmem:[#allocation7 + $0x38] sm:$0xff]  ;;  %v168_v22 = vld [vmem:[#allocation7 + $0x48] sm:$0xff]  ;;  %v169_v24 = vld [vmem:[#allocation7 + $0x50] sm:$0xff] }
  0x4f   :  { %493 = vmatprep.subr.bf16.mxu1 %v676_v0  ;;  %v500_v20 = vpack.c.bf16 %v166_v19, %v165_v18  ;;  %v503_v23 = vpack.c.bf16 %v168_v22, %v167_v21  ;;  %v170_v25 = vld [vmem:[#allocation7 + $0x58] sm:$0xff]  ;;  %v171_v27 = vld [vmem:[#allocation7 + $0x60] sm:$0xff]  ;;  %v172_v28 = vld [vmem:[#allocation7 + $0x68] sm:$0xff]  ;;  %p647_p7 = por %p646_p6, %p645_p5 }
  0x50   :  { %v506_v26 = vpack.c.bf16 %v170_v25, %v169_v24  ;;  %v509_v29 = vpack.c.bf16 %v172_v28, %v171_v27  ;;  %v173_v30 = vld [vmem:[#allocation7 + $0x70] sm:$0xff]  ;;  %v174_v31 = vld [vmem:[#allocation7 + $0x78] sm:$0xff]  ;;  %v251_v33 = vld [vmem:[#allocation8] sm:$0xff] }
  0x51   :  { %489 = vmatpush3.bf16.msra.mxu0 %v488_v11  ;;  %v512_v32 = vpack.c.bf16 %v174_v31, %v173_v30  ;;  %v252_v34 = vld [vmem:[#allocation8 + $0x8] sm:$0xff]  ;;  %v253_v35 = vld [vmem:[#allocation8 + $0x10] sm:$0xff]  ;;  %v254_v37 = vld [vmem:[#allocation8 + $0x18] sm:$0xff]  ;;  %p648_p8 = pnand %p647_p7, %p641_p4 }
  0x52   :  { %514 = vmatprep.subr.bf16.mxu0 %v676_v0  ;;  %495 = vmatpush3.bf16.msra.mxu1 %v494_v13  ;;  %v515_v36 = vpack.c.bf16 %v252_v34, %v251_v33  ;;  %v518_v38 = vpack.c.bf16 %v254_v37, %v253_v35  ;;  %v255_v39 = vld [vmem:[#allocation8 + $0x20] sm:$0xff]  ;;  %v256_v40 = vld [vmem:[#allocation8 + $0x28] sm:$0xff]  ;;  %v257_v42 = vld [vmem:[#allocation8 + $0x30] sm:$0xff] }
  0x53   :  { %496 = vmatprep.subr.bf16.mxu1 %v676_v0  ;;  %v521_v41 = vpack.c.bf16 %v256_v40, %v255_v39  ;;  %v258_v43 = vld [vmem:[#allocation8 + $0x38] sm:$0xff]  ;;  %v259_v45 = vld [vmem:[#allocation8 + $0x40] sm:$0xff]  ;;  %v260_v46 = vld [vmem:[#allocation8 + $0x48] sm:$0xff] }
  0x54   :  { %412 = vmatmul.mubr.msk.f32.vlgmr.msra.gmra.mrb[0].mxu0 %vm84_vm1, %v74_v16  ;;  %v524_v44 = vpack.c.bf16 %v258_v43, %v257_v42  ;;  %v527_v47 = vpack.c.bf16 %v260_v46, %v259_v45  ;;  %v360_v48 = vld [vmem:[%s813_s4] ss:$0 sm:$0xff]  ;;  %v262_v54 = vld [vmem:[#allocation8 + $0x58] sm:$0xff]  ;;  %v263_v56 = vld [vmem:[#allocation8 + $0x60] sm:$0xff] }
  0x55   :  { %481 = vmatprep.mubr.msk.f32.mxu0 %vm677_vm0, %v678_v1  ;;  %516 = vmatpush3.bf16.msra.mxu0 %v515_v36  ;;  %v261_v53 = vld [vmem:[#allocation8 + $0x50] sm:$0xff]  ;;  %v264_v57 = vld [vmem:[#allocation8 + $0x68] sm:$0xff]  ;;  %v266_v60 = vld [vmem:[#allocation8 + $0x78] sm:$0xff] }
  0x56   :  { %498 = vmatpush3.bf16.msra.mxu1 %v497_v17  ;;  %517 = vmatprep.subr.bf16.mxu0 %v676_v0  ;;  %v530_v55 = vpack.c.bf16 %v262_v54, %v261_v53  ;;  %v533_v58 = vpack.c.bf16 %v264_v57, %v263_v56  ;;  %v265_v59 = vld [vmem:[#allocation8 + $0x70] sm:$0xff]  ;;  %v363_v4 = vld [vmem:[%s813_s4 + $0x2] ss:$0 sm:$0xff] }
  0x57   :  { %499 = vmatprep.subr.bf16.mxu1 %v676_v0  ;;  %v536_v61 = vpack.c.bf16 %v266_v60, %v265_v59  ;;  %v362_v62 = vld [vmem:[%s813_s4 + $0x1] ss:$0 sm:$0xff] }
  0x59   :  { %519 = vmatpush3.bf16.msra.mxu0 %v518_v38 }
  0x5a   :  { %501 = vmatpush3.bf16.msra.mxu1 %v500_v20  ;;  %520 = vmatprep.subr.bf16.mxu0 %v676_v0 }
  0x5b   :  { %502 = vmatprep.subr.bf16.mxu1 %v676_v0 }
  0x5d   :  { %522 = vmatpush3.bf16.msra.mxu0 %v521_v41 }
  0x5e   :  { %504 = vmatpush3.bf16.msra.mxu1 %v503_v23  ;;  %523 = vmatprep.subr.bf16.mxu0 %v676_v0 }
  0x5f   :  { %505 = vmatprep.subr.bf16.mxu1 %v676_v0 }
  0x61   :  { %525 = vmatpush3.bf16.msra.mxu0 %v524_v44 }
  0x62   :  { %507 = vmatpush3.bf16.msra.mxu1 %v506_v26  ;;  %526 = vmatprep.subr.bf16.mxu0 %v676_v0 }
  0x63   :  { %508 = vmatprep.subr.bf16.mxu1 %v676_v0 }
  0x65   :  { %528 = vmatpush3.bf16.msra.mxu0 %v527_v47 }
  0x66   :  { %510 = vmatpush3.bf16.msra.mxu1 %v509_v29  ;;  %529 = vmatprep.subr.bf16.mxu0 %v676_v0 }
  0x67   :  { %511 = vmatprep.subr.bf16.mxu1 %v676_v0 }
  0x69   :  { %531 = vmatpush3.bf16.msra.mxu0 %v530_v55 }
  0x6a   :  { %513 = vmatpush3.bf16.msra.mxu1 %v512_v32  ;;  %532 = vmatprep.subr.bf16.mxu0 %v676_v0 }
  0x6d   :  { %534 = vmatpush3.bf16.msra.mxu0 %v533_v58 }
  0x6e   :  { %535 = vmatprep.subr.bf16.mxu0 %v676_v0 }
  0x71   :  { %537 = vmatpush3.bf16.msra.mxu0 %v536_v61 }
 0x127   :  { %v154_v49 = vpop.f32.mrb[0].mxu0 }
 0x128   :  { %v155_v50 = vadd.f32 %v360_v48, %v154_v49  ;;  %v413_v51 = vpop.f32.mrb[1].mxu0 }
 0x12a   :  { %548 = vtanh.f32 %v155_v50 }
 0x134   :  { %v549_v52 = vpop.eup %548 }
 0x135   :  { %447 = vmatmul.mubr.f32.vlgmr.msra.gmra.mrb[0].mxu1 %v549_v52 }
 0x208   :  { %v246_v63 = vpop.f32.mrb[0].mxu1 }
 0x209   :  { %v247_v1 = vadd.f32 %v362_v62, %v246_v63  ;;  %v448_v2 = vpop.f32.mrb[1].mxu1 }
 0x20b   :  { %550 = vtanh.f32 %v247_v1 }
 0x215   :  { %v551_v3 = vpop.eup %550 }
 0x216   :  { %482 = vmatmul.mubr.f32.vlgmr.msra.gmra.mrb[2].mxu0 %v551_v3 }
 0x2e9   :  { %v338_v5 = vpop.f32.mrb[2].mxu0 }
 0x2ea   :  { %v339_v6 = vadd.f32 %v363_v4, %v338_v5  ;;  %v483_v0 = vpop.f32.mrb[3].mxu0 }
 0x2ec   :  { %342 = vst [vmem:[#allocation10] sm:$0x3] %v339_v6 }
 0x2ed   :  { %651 = shalt.err (!%p648_p8)
}
 0x2ee   :  { %s652_s24 = scalar_lea.hbm %s814_s5, 32 }
 0x2ef   :  { %p653_p9 = scmp.ne.s32.totalorder %s814_s5, %s652_s24  ;;  %p656_p10 = scmp.lt.u32.totalorder %s652_s24, %s814_s5 }
 0x2f1   :  { %p658_p11 = pnand %p656_p10, %p653_p9 }
 0x2f3   :  { %661 = shalt.err (!%p658_p11)
}
 0x2f4   :  { %352 = dma.vmem_to_hbm [thread:$0]  %s350_s20, 32, %s814_s5, [#allocation4]  }
 0x2f5   :  { %668 = dma.done.wait [#allocation4], 32  }
 0x2f6   :  { %669 = vsyncadd [#allocation4], 4294967264 }
 0x2f7   :  { %356 = vsyncpa [#allocation3], 1 }
 0x2f8   :  { %357 = vsyncpa [#allocation6], 1 }
 0x2f9   :  { %358 = vsyncpa [#allocation9], 1 }
 0x2fa   :  { %359 = vsyncpa [#allocation4], 1 }

</bundles_post_ra>
